<compile_context>
chip_gen: v5e
topology: v5e:2x2
jax: 0.10.0
libtpu: 0.0.40
codegen_flags: <defaults>
</compile_context>

<pallas_src>
import jax
import jax.numpy as jnp
from jax.experimental import pallas as pl
from jax.experimental.pallas import tpu as pltpu

_LANE = 128
_PER_BLOCK_BYTES_CAP = 4 * 1024 * 1024     # per-input-block payload target
_VMEM_HEADROOM = 2 * 1024 * 1024           # slack under the scoped-VMEM limit


def _cdiv(a, b):
    return (a + b - 1) // b


def _round_up(x, m):
    return _cdiv(x, m) * m


def _round_down(x, m):
    return (x // m) * m


def _vmem_limit_bytes():
    """Generation-aware scoped-VMEM limit (stays well under physical VMEM)."""
    cap = 64 * 1024 * 1024  # conservative default: v7x per-TensorCore VMEM
    try:
        info = pltpu.get_tpu_info()
        for attr in ("vmem_capacity_bytes", "vmem_size_bytes", "vmem_bytes"):
            v = getattr(info, attr, None)
            if v:
                cap = int(v)
                break
    except Exception:
        pass
    # ~70% of physical, never above 48 MiB:
    #   v5e/v6e (128 MiB physical) -> 48 MiB, v7x (64 MiB physical) -> ~44 MiB.
    return min(int(cap * 0.7), 48 * 1024 * 1024)


def _choose_layout(shape, itemsize, k, vmem_limit):
    """Pick a copy-free 2-D view (rows, cols) and a row-tile tm.

    Returns (rows, cols, tm) with rows*cols == prod(shape)."""
    n = 1
    for d in shape:
        n *= d
    # Dtype-aware sublane granule: 8 rows f32, 16 bf16, 32 int8/fp8.
    granule = max(8, 32 // itemsize)
    budget = max(vmem_limit - _VMEM_HEADROOM, 1 * 1024 * 1024)

    if n % _LANE == 0:
        cols = _LANE                        # fully lane-dense, unmasked stores
    else:
        # Ragged total count: merge contiguous trailing dims into the widest
        # full-extent column block the budget allows, so only the trailing
        # partial lane-group is ever masked (no per-row masked stores).
        cols = shape[-1]
        for d in reversed(shape[:-1]):
            nxt = cols * d
            need = granule * _round_up(nxt, _LANE) * itemsize * 2 * (k + 1)
            if need <= budget:
                cols = nxt
            else:
                break
    rows = n // cols
    padded_cols = _round_up(cols, _LANE)

    # Bytes-based tile sizing: per-input block capped at 4 MiB and by the
    # double-buffered (K inputs + 1 output) working-set budget.
    block_cap = min(_PER_BLOCK_BYTES_CAP, budget // (2 * (k + 1)))
    tm = max(granule, _round_down(block_cap // (padded_cols * itemsize), granule))

    if tm >= rows:
        if rows >= 2 * granule:
            # Keep at least 2 grid steps so v7x can shard across both TCs
            # (and DMA/compute overlap kicks in on all generations).
            tm = _round_up(_cdiv(rows, 2), granule)
        else:
            tm = rows                       # full extent (allowed even if <8)
    else:
        # Prefer a tile that divides rows evenly -> no ragged/masked last block.
        if rows % tm != 0:
            lo = max(granule, tm // 2)
            for cand in range(tm, lo - 1, -granule):
                if rows % cand == 0:
                    tm = cand
                    break
    return rows, cols, tm


def _scalar_mix_kernel(w_ref, *refs):
    """Weighted sum of K tiles:  out = sum_k w[k] * x_k.

    w_ref : SMEM (K,) float32  -- gamma * softmax(scalar_parameters), prefolded
    refs  : K input VMEM refs of shape (TM, C), followed by the output ref.
    """
    x_refs, o_ref = refs[:-1], refs[-1]
    # K is tiny (number of layers); static unroll is the cheapest reduction.
    # f32 accumulate + single downcast: free under the HBM-bandwidth bound.
    acc = w_ref[0] * x_refs[0][...].astype(jnp.float32)
    for k in range(1, len(x_refs)):
        acc = acc + w_ref[k] * x_refs[k][...].astype(jnp.float32)
    o_ref[...] = acc.astype(o_ref.dtype)


def scalar_mix(tensors, scalar_parameters, gamma):
    """Pallas ScalarMix forward.

    tensors: list of K arrays, all the same shape (at least 2-D).
    scalar_parameters: (K,) float32 raw mixing logits (w in the paper).
    gamma: scalar float32.
    """
    k = len(tensors)
    assert scalar_parameters.shape == (k,)
    orig_shape = tensors[0].shape
    dtype = tensors[0].dtype
    for t in tensors:
        assert t.shape == orig_shape and t.dtype == dtype

    itemsize = jnp.dtype(dtype).itemsize
    n = 1
    for d in orig_shape:
        n *= d

    vmem_limit = _vmem_limit_bytes()
    rows, cols, tm = _choose_layout(orig_shape, itemsize, k, vmem_limit)
    grid = (_cdiv(rows, tm),)

    # Free, contiguous reshapes -- no extra HBM copy (unlike jnp.stack).
    xs = [t.reshape(rows, cols) for t in tensors]

    # Tiny K-element softmax + gamma fold: parameter setup, done in plain JAX.
    normed = jax.nn.softmax(scalar_parameters.astype(jnp.float32), axis=0)
    weights = (jnp.asarray(gamma, jnp.float32) * normed).astype(jnp.float32)

    cost = pl.CostEstimate(
        flops=2 * k * n,
        transcendentals=0,
        bytes_accessed=(k + 1) * n * itemsize + 4 * k,
    )

    out = pl.pallas_call(
        _scalar_mix_kernel,
        out_shape=jax.ShapeDtypeStruct((rows, cols), dtype),
        grid_spec=pl.GridSpec(
            grid=grid,
            in_specs=(
                [pl.BlockSpec(memory_space=pltpu.MemorySpace.SMEM)]
                + [pl.BlockSpec((tm, cols), lambda i: (i, 0)) for _ in range(k)]
            ),
            out_specs=pl.BlockSpec((tm, cols), lambda i: (i, 0)),
        ),
        compiler_params=pltpu.CompilerParams(
            dimension_semantics=("parallel",),
            vmem_limit_bytes=vmem_limit,
        ),
        cost_estimate=cost,
    )(weights, *xs)

    return out.reshape(orig_shape)


if __name__ == "__main__":
    # --- Primary check: ScalarMix default init, small (B, S, H) activations ---
    mixture_size = 4
    B, S, H = 2, 8, 32

    # Deterministic parameter init matching ScalarMix.__init__:
    #   scalar_parameters = [0.0] * mixture_size, gamma = 1.0
    scalar_parameters = jnp.zeros((mixture_size,), dtype=jnp.float32)
    gamma = jnp.array(1.0, dtype=jnp.float32)

    key = jax.random.PRNGKey(0)
    keys = jax.random.split(key, mixture_size)
    tensors = [
        jax.random.normal(keys[i], (B, S, H), dtype=jnp.float32)
        for i in range(mixture_size)
    ]

    out = jax.block_until_ready(scalar_mix(tensors, scalar_parameters, gamma))
    w_ref = gamma * jax.nn.softmax(scalar_parameters)
    ref = sum(w_ref[i] * tensors[i] for i in range(mixture_size))
    assert out.shape == (B, S, H)
    assert jnp.allclose(out, ref, atol=1e-5, rtol=1e-5)

    # --- Secondary check: bf16 inputs, multi-step grid (dtype-aware granule) ---
    k2 = 3
    sp2 = jax.random.normal(jax.random.PRNGKey(1), (k2,), dtype=jnp.float32)
    g2 = jnp.array(0.5, dtype=jnp.float32)
    keys2 = jax.random.split(jax.random.PRNGKey(2), k2)
    t2 = [
        jax.random.normal(keys2[i], (4, 128, 256), dtype=jnp.float32).astype(jnp.bfloat16)
        for i in range(k2)
    ]
    out2 = jax.block_until_ready(scalar_mix(t2, sp2, g2))
    w2 = g2 * jax.nn.softmax(sp2)
    ref2 = sum(w2[i] * t2[i].astype(jnp.float32) for i in range(k2))
    assert jnp.allclose(out2.astype(jnp.float32), ref2, atol=2e-2, rtol=2e-2)

    # --- Secondary check: lane-ragged element count (n % 128 != 0) ---
    k3 = 4
    sp3 = jax.random.normal(jax.random.PRNGKey(3), (k3,), dtype=jnp.float32)
    g3 = jnp.array(1.3, dtype=jnp.float32)
    keys3 = jax.random.split(jax.random.PRNGKey(4), k3)
    t3 = [
        jax.random.normal(keys3[i], (2, 7, 9), dtype=jnp.float32)
        for i in range(k3)
    ]
    out3 = jax.block_until_ready(scalar_mix(t3, sp3, g3))
    w3 = g3 * jax.nn.softmax(sp3)
    ref3 = sum(w3[i] * t3[i] for i in range(k3))
    assert jnp.allclose(out3, ref3, atol=1e-5, rtol=1e-5)

    print("KERNEL_OK")
</pallas_src>

<mosaic_0001>
module attributes {stable_mosaic.version = 11 : i64} {
  func.func @_scalar_mix_kernel(%arg0: i32, %arg1: memref<4xf32, #tpu.memory_space<smem>>, %arg2: memref<4x128xf32, #tpu.memory_space<vmem>>, %arg3: memref<4x128xf32, #tpu.memory_space<vmem>>, %arg4: memref<4x128xf32, #tpu.memory_space<vmem>>, %arg5: memref<4x128xf32, #tpu.memory_space<vmem>>, %arg6: memref<4x128xf32, #tpu.memory_space<vmem>>) attributes {dimension_semantics = [#tpu.dimension_semantics<parallel>], iteration_bounds = array<i64: 1>, scalar_prefetch = 0 : i64, scratch_operands = 0 : i64, tpu.core_type = #tpu.core_type<tc>, window_params = [{transform_indices = @transform_0, window_bounds = array<i64: 4>}, {transform_indices = @transform_1, window_bounds = array<i64: 4, 128>}, {transform_indices = @transform_2, window_bounds = array<i64: 4, 128>}, {transform_indices = @transform_3, window_bounds = array<i64: 4, 128>}, {transform_indices = @transform_4, window_bounds = array<i64: 4, 128>}, {transform_indices = @transform_5, window_bounds = array<i64: 4, 128>}]} {
    %c0 = arith.constant 0 : index
    %0 = memref.load %arg1[%c0] : memref<4xf32, #tpu.memory_space<smem>>
    %c0_0 = arith.constant 0 : index
    %c0_1 = arith.constant 0 : index
    %1 = vector.load %arg2[%c0_0, %c0_1] : memref<4x128xf32, #tpu.memory_space<vmem>>, vector<4x128xf32>
    %2 = vector.broadcast %0 : f32 to vector<4x128xf32>
    %3 = arith.mulf %2, %1 : vector<4x128xf32>
    %c1 = arith.constant 1 : index
    %4 = memref.load %arg1[%c1] : memref<4xf32, #tpu.memory_space<smem>>
    %c0_2 = arith.constant 0 : index
    %c0_3 = arith.constant 0 : index
    %5 = vector.load %arg3[%c0_2, %c0_3] : memref<4x128xf32, #tpu.memory_space<vmem>>, vector<4x128xf32>
    %6 = vector.broadcast %4 : f32 to vector<4x128xf32>
    %7 = arith.mulf %6, %5 : vector<4x128xf32>
    %8 = arith.addf %3, %7 : vector<4x128xf32>
    %c2 = arith.constant 2 : index
    %9 = memref.load %arg1[%c2] : memref<4xf32, #tpu.memory_space<smem>>
    %c0_4 = arith.constant 0 : index
    %c0_5 = arith.constant 0 : index
    %10 = vector.load %arg4[%c0_4, %c0_5] : memref<4x128xf32, #tpu.memory_space<vmem>>, vector<4x128xf32>
    %11 = vector.broadcast %9 : f32 to vector<4x128xf32>
    %12 = arith.mulf %11, %10 : vector<4x128xf32>
    %13 = arith.addf %8, %12 : vector<4x128xf32>
    %c3 = arith.constant 3 : index
    %14 = memref.load %arg1[%c3] : memref<4xf32, #tpu.memory_space<smem>>
    %c0_6 = arith.constant 0 : index
    %c0_7 = arith.constant 0 : index
    %15 = vector.load %arg5[%c0_6, %c0_7] : memref<4x128xf32, #tpu.memory_space<vmem>>, vector<4x128xf32>
    %16 = vector.broadcast %14 : f32 to vector<4x128xf32>
    %17 = arith.mulf %16, %15 : vector<4x128xf32>
    %18 = arith.addf %13, %17 : vector<4x128xf32>
    %c0_8 = arith.constant 0 : index
    %c0_9 = arith.constant 0 : index
    %19 = vector.load %arg6[%c0_8, %c0_9] : memref<4x128xf32, #tpu.memory_space<vmem>>, vector<4x128xf32>
    tpu.vector_store %arg6[%c0_8, %c0_9], %18 {strides = array<i32>} : memref<4x128xf32, #tpu.memory_space<vmem>>, vector<4x128xf32>,
    return
  }
  func.func @transform_0(%arg0: i32) -> i32 {
    %c0_i32 = arith.constant 0 : i32
    %c0_i32_0 = arith.constant 0 : i32
    return %c0_i32 : i32
  }
  func.func @transform_1(%arg0: i32) -> (i32, i32) {
    %c0_i32 = arith.constant 0 : i32
    %c0_i32_0 = arith.constant 0 : i32
    return %arg0, %c0_i32 : i32, i32
  }
  func.func @transform_2(%arg0: i32) -> (i32, i32) {
    %c0_i32 = arith.constant 0 : i32
    %c0_i32_0 = arith.constant 0 : i32
    return %arg0, %c0_i32 : i32, i32
  }
  func.func @transform_3(%arg0: i32) -> (i32, i32) {
    %c0_i32 = arith.constant 0 : i32
    %c0_i32_0 = arith.constant 0 : i32
    return %arg0, %c0_i32 : i32, i32
  }
  func.func @transform_4(%arg0: i32) -> (i32, i32) {
    %c0_i32 = arith.constant 0 : i32
    %c0_i32_0 = arith.constant 0 : i32
    return %arg0, %c0_i32 : i32, i32
  }
  func.func @transform_5(%arg0: i32) -> (i32, i32) {
    %c0_i32 = arith.constant 0 : i32
    %c0_i32_0 = arith.constant 0 : i32
    return %arg0, %c0_i32 : i32, i32
  }
}

</mosaic_0001>

<bundles_post_ra>
// kernel: tpu_custom_call.1
= control target key start
LH: loop header
LB: loop body
LE: loop exit
PB: predicated region body
PF: predicated region fallthrough
CT: control target
= control target key end

     0   :  { %10 = vsyncpa [#allocation5], 0  ;;  %s334_s0 = inlined_call_operand.hbm [shape: f32[4], index: 0, kind: input, shape index: {}]   ;;  %s335_s1 = inlined_call_operand.hbm [shape: f32[4,128], index: 1, kind: input, shape index: {}]   ;;  %s336_s2 = inlined_call_operand.hbm [shape: f32[4,128], index: 2, kind: input, shape index: {}]   ;;  %s337_s3 = inlined_call_operand.hbm [shape: f32[4,128], index: 3, kind: input, shape index: {}]   ;;  %s338_s4 = inlined_call_operand.hbm [shape: f32[4,128], index: 4, kind: input, shape index: {}]   ;;  %s339_s5 = inlined_call_operand.hbm [shape: f32[4,128], index: 5, kind: output, shape index: {}]  }
   0x1   :  { %11 = vsyncpa [#allocation3], 0 }
   0x2   :  { %12 = vsyncpa [#allocation8], 0 }
   0x3   :  { %13 = vsyncpa [#allocation11], 0  ;;  %s40_s20 = sshll.u32 %s336_s2, 4  ;;  %s41_s20 = int_to_ptr.hbm [resolvable:$true] %s40_s20 }
   0x4   :  { %14 = vsyncpa [#allocation4], 0  ;;  %s280_s21 = smov [#allocation7]   ;;  %s20_s25 = sshll.u32 %s334_s0, 4  ;;  %s21_s25 = int_to_ptr.hbm [resolvable:$true] %s20_s25 }
   0x5   :  { %s42_s22 = sshll.u32 %s280_s21, 4  ;;  %s281_s26 = smov [#allocation2]   ;;  %s43_s22 = int_to_ptr.vmem [resolvable:$true] %s42_s22 }
   0x6   :  { %45 = dma.hbm_to_vmem [thread:$0]  %s41_s20, 64, %s43_s22, [#allocation8]  }
   0x7   :  { %23 = dma.hbm_to_smem %s21_s25, 16, %s281_s26, [#allocation5]  }
   0x8   :  { %s29_s29 = sshll.u32 %s335_s1, 4  ;;  %s282_s30 = smov [#allocation6]   ;;  %s30_s29 = int_to_ptr.hbm [resolvable:$true] %s29_s29 }
   0x9   :  { %s31_s2 = sshll.u32 %s282_s30, 4  ;;  %s51_s8 = sshll.u32 %s337_s3, 4  ;;  %s32_s2 = int_to_ptr.vmem [resolvable:$true] %s31_s2  ;;  %s52_s8 = int_to_ptr.hbm [resolvable:$true] %s51_s8 }
   0xa   :  { %34 = dma.hbm_to_vmem [thread:$0]  %s30_s29, 64, %s32_s2, [#allocation3]  }
   0xb   :  { %s283_s9 = smov [#allocation9]   ;;  %s62_s12 = sshll.u32 %s338_s4, 4  ;;  %s63_s12 = int_to_ptr.hbm [resolvable:$true] %s62_s12 }
   0xc   :  { %s53_s0 = sshll.u32 %s283_s9, 4  ;;  %s284_s1 = smov [#allocation10]   ;;  %s54_s0 = int_to_ptr.vmem [resolvable:$true] %s53_s0 }
   0xd   :  { %56 = dma.hbm_to_vmem [thread:$0]  %s52_s8, 64, %s54_s0, [#allocation8]  }
   0xe   :  { %s64_s13 = sshll.u32 %s284_s1, 4  ;;  %s65_s13 = int_to_ptr.vmem [resolvable:$true] %s64_s13 }
   0xf   :  { %67 = dma.hbm_to_vmem [thread:$0]  %s63_s12, 64, %s65_s13, [#allocation11]  }
  0x10   :  { %270 = dma.done.wait [#allocation5], 16  }
  0x11   :  { %271 = vsyncadd [#allocation5], 4294967280 }
  0x12   :  { %272 = dma.done.wait [#allocation3], 64  }
  0x13   :  { %273 = vsyncadd [#allocation3], 4294967232 }
  0x14   :  { %274 = dma.done.wait [#allocation8], 128  }
  0x15   :  { %275 = vsyncadd [#allocation8], 4294967168 }
  0x16   :  { %276 = dma.done.wait [#allocation11], 64  }
  0x17   :  { %277 = vsyncadd [#allocation11], 4294967232 }
  0x18   :  { %88 = sfence }
  0x19   :  { %s89_s3 = sld [smem:[#allocation2]]  ;;  %v90_v0 = vld [vmem:[#allocation6] sm:$0xf]  ;;  %v94_v1 = vld [vmem:[#allocation7] sm:$0xf]  ;;  %s285_s16 = smov [#allocation12]  }
  0x1a   :  { %s129_s14 = sld [smem:[#allocation2 + $0x1]]  ;;  %v99_v3 = vld [vmem:[#allocation9] sm:$0xf]  ;;  %v104_v6 = vld [vmem:[#allocation10] sm:$0xf]  ;;  %s114_s17 = sshll.u32 %s285_s16, 4  ;;  %s115_s17 = int_to_ptr.vmem [resolvable:$true] %s114_s17 }
  0x1b   :  { %s130_s15 = sld [smem:[#allocation2 + $0x2]]  ;;  %s116_s20 = sshll.u32 %s339_s5, 4  ;;  %s117_s20 = int_to_ptr.hbm [resolvable:$true] %s116_s20 }
  0x1c   :  { %s131_s4 = sld [smem:[#allocation2 + $0x3]] }
  0x1f   :  { %v91_v2 = vstv %s89_s3 }
  0x20   :  { %v92_v4 = vmul.f32 %v91_v2, %v90_v0  ;;  %v95_v5 = vstv %s129_s14 }
  0x21   :  { %v96_v7 = vmul.f32 %v95_v5, %v94_v1  ;;  %v100_v8 = vstv %s130_s15 }
  0x22   :  { %v101_v9 = vmul.f32 %v100_v8, %v99_v3  ;;  %v105_v10 = vstv %s131_s4 }
  0x23   :  { %v97_v11 = vadd.f32 %v96_v7, %v92_v4  ;;  %v106_v12 = vmul.f32 %v105_v10, %v104_v6 }
  0x25   :  { %v102_v13 = vadd.f32 %v101_v9, %v97_v11 }
  0x27   :  { %v107_v14 = vadd.f32 %v106_v12, %v102_v13 }
  0x29   :  { %108 = vst [vmem:[#allocation12] sm:$0xf] %v107_v14 }
  0x2a   :  { %119 = dma.vmem_to_hbm [thread:$0]  %s115_s17, 64, %s117_s20, [#allocation4]  }
  0x2b   :  { %278 = dma.done.wait [#allocation4], 64  }
  0x2c   :  { %279 = vsyncadd [#allocation4], 4294967232 }
  0x2d   :  { %124 = vsyncpa [#allocation3], 1 }
  0x2e   :  { %125 = vsyncpa [#allocation8], 1 }
  0x2f   :  { %126 = vsyncpa [#allocation11], 1 }
  0x30   :  { %127 = vsyncpa [#allocation4], 1 }
  0x31   :  { %128 = vsyncpa [#allocation5], 1 }

</bundles_post_ra>
